<compile_context>
chip_gen: v7x
topology: tpu7x:2x2x1
jax: 0.10.0
libtpu: 0.0.40
codegen_flags: <defaults>
</compile_context>

<pallas_src>
import jax
import jax.numpy as jnp
from jax.experimental import pallas as pl
from jax.experimental.pallas import tpu as pltpu

NEG_SLOPE = 0.2      # GATConv_JJ default negative_slope
MASK_VAL = -1e30     # "minus infinity" for masked (non-)edges (kept in f32)
VMEM_LIMIT = 32 * 1024 * 1024   # explicit scoped-VMEM cap (safe on v5e/v6e/v7x)


def _row_tile(n):
    # Biggest safe destination/row tile: full array when small, else a 128-multiple.
    # NOTE(v7x): 64 MiB VMEM per TC -> keep the per-step working set (adj tile bf16
    # double-buffered + (TM,N) f32 temporaries + resident ph) well under the limit.
    return n if n <= 512 else 256


# --------------------------------------------------------------------- projection kernel
def _project_kernel(x_ref, w_ref, al_ref, ar_ref, ph_ref, el_ref, er_ref):
    # x_ref  : (TMp, Din)   node-feature row tile
    # w_ref  : (Din, H*F)   fused projection weights (single lane-dense matmul)
    # al_ref : (1, H*F)     attn_l (head-major flat)
    # ar_ref : (1, H*F)     attn_r
    # ph_ref : (TMp, H*F)   projected features (lane-dense)
    # el_ref : (H, TMp)     source attention scores, row layout per head
    # er_ref : (TMp, H)     destination attention scores, column layout
    H = el_ref.shape[0]
    F = w_ref.shape[1] // H

    ph = jnp.dot(x_ref[...], w_ref[...], preferred_element_type=jnp.float32)
    ph_ref[...] = ph

    el_rows = []
    er_cols = []
    for h in range(H):                                   # H is a small static constant
        phh = ph[:, h * F:(h + 1) * F]                   # (TMp, F) static lane slice
        alh = al_ref[:, h * F:(h + 1) * F]               # (1, F)
        arh = ar_ref[:, h * F:(h + 1) * F]
        # el as a (1, TMp) row (done once per row tile here, NOT in the attention hot loop)
        el_rows.append(jax.lax.dot_general(
            alh, phh, (((1,), (1,)), ((), ())), preferred_element_type=jnp.float32))
        # er as a (TMp, 1) column via VPU reduction
        er_cols.append(jnp.sum(phh * arh, axis=-1, keepdims=True))
    el_ref[...] = jnp.concatenate(el_rows, axis=0)       # (H, TMp)
    er_ref[...] = jnp.concatenate(er_cols, axis=-1)      # (TMp, H)


# --------------------------------------------------------------------- attention kernel
def _gat_attn_kernel(ph_ref, el_ref, er_ref, adj_ref, out_ref):
    # ph_ref : (N, H*F)  projected source features (resident)
    # el_ref : (H, N)    source scores (row layout)
    # er_ref : (TM, H)   destination scores for this tile
    # adj_ref: (TM, N)   bf16 adjacency tile, adj[dst, src]
    # out_ref: (TM, H*F) lane-dense output tile
    H = el_ref.shape[0]
    HF = ph_ref.shape[1]
    F = HF // H

    mask = adj_ref[...] > 0.0                            # computed once, reused per head
    outs = []
    for h in range(H):                                   # static head loop
        e = er_ref[:, h:h + 1] + el_ref[h:h + 1, :]      # (TM, N) broadcast add
        e = jnp.maximum(e, NEG_SLOPE * e)                # leaky_relu: one mul + one max
        e = jnp.where(mask, e, MASK_VAL)                 # masking stays in f32
        m = jnp.max(e, axis=-1, keepdims=True)
        p = jnp.where(mask, jnp.exp(e - m), 0.0)
        s = jnp.sum(p, axis=-1, keepdims=True)
        s = jnp.maximum(s, 1.0)                          # zero-in-degree guard (s>=1 otherwise)

        phh = ph_ref[:, h * F:(h + 1) * F]               # (N, F) static slice
        agg = jnp.dot(p.astype(jnp.bfloat16), phh.astype(jnp.bfloat16),
                      preferred_element_type=jnp.float32)        # (TM, F) on MXU (bf16)
        # fold 1/sum into the small (TM, F) result instead of the (TM, N) p matrix
        outs.append(agg * pl.reciprocal(s, approx=True))
    out_ref[...] = jnp.concatenate(outs, axis=-1)        # lane-dense (TM, H*F) store


def gat_attention_aggregate(x, w, attn_l, attn_r, adj, num_heads):
    """x:(N,Din); w:(Din,H*F); attn_*:(1,H*F); adj:(N,N) {0,1}. Returns (N, H*F)."""
    N, Din = x.shape
    HF = w.shape[1]
    H = num_heads

    adj_bf16 = adj.astype(jnp.bfloat16)                  # kernel only needs adj > 0

    # ---- kernel 1: fused projection + attention scores (tiled over rows)
    TMp = _row_tile(N)
    ph, el_t, er = pl.pallas_call(
        _project_kernel,
        out_shape=(jax.ShapeDtypeStruct((N, HF), jnp.float32),
                   jax.ShapeDtypeStruct((H, N), jnp.float32),
                   jax.ShapeDtypeStruct((N, H), jnp.float32)),
        grid=(pl.cdiv(N, TMp),),
        in_specs=[
            pl.BlockSpec((TMp, Din), lambda i: (i, 0)),
            pl.BlockSpec((Din, HF), lambda i: (0, 0)),
            pl.BlockSpec((1, HF), lambda i: (0, 0)),
            pl.BlockSpec((1, HF), lambda i: (0, 0)),
        ],
        out_specs=(pl.BlockSpec((TMp, HF), lambda i: (i, 0)),
                   pl.BlockSpec((H, TMp), lambda i: (0, i)),
                   pl.BlockSpec((TMp, H), lambda i: (i, 0))),
        compiler_params=pltpu.CompilerParams(
            dimension_semantics=("parallel",),
            vmem_limit_bytes=VMEM_LIMIT),
    )(x, w, attn_l, attn_r)

    # ---- kernel 2: masked edge-softmax + aggregation (tiled over destination nodes)
    TM = _row_tile(N)
    out = pl.pallas_call(
        _gat_attn_kernel,
        out_shape=jax.ShapeDtypeStruct((N, HF), jnp.float32),
        grid=(pl.cdiv(N, TM),),
        in_specs=[
            pl.BlockSpec((N, HF), lambda d: (0, 0)),     # ph resident
            pl.BlockSpec((H, N), lambda d: (0, 0)),      # el rows resident
            pl.BlockSpec((TM, H), lambda d: (d, 0)),     # er tile
            pl.BlockSpec((TM, N), lambda d: (d, 0)),     # adj tile (bf16)
        ],
        out_specs=pl.BlockSpec((TM, HF), lambda d: (d, 0)),
        compiler_params=pltpu.CompilerParams(
            dimension_semantics=("parallel",),           # dst tiles independent -> megacore
            vmem_limit_bytes=VMEM_LIMIT),
    )(ph, el_t, er, adj_bf16)
    return out                                           # (N, H*F), no HBM transpose needed


# --------------------------------------------------------------------- JJ_Norm blend kernel
def _jj_blend_kernel(x_ref, mean_ref, alpha_ref, train_ref, bias_ref, out_ref):
    # out[u] = alpha[t_u]*x[u] + (1-alpha[t_u])*train_mean[t_u,label_u]   (train nodes)
    # out[u] = x[u]                                                       (test nodes)
    # + bias (fused explicit-bias add)
    x = x_ref[...]
    alpha = alpha_ref[...]
    blended = alpha * x + (1.0 - alpha) * mean_ref[...]
    out_ref[...] = jnp.where(train_ref[...] > 0.0, blended, x) + bias_ref[...]


def jj_blend(x2d, mean_node, alpha_node, train_mask, bias):
    N, D = x2d.shape
    TMB = N if N <= 1024 else 512
    return pl.pallas_call(
        _jj_blend_kernel,
        out_shape=jax.ShapeDtypeStruct((N, D), jnp.float32),
        grid=(pl.cdiv(N, TMB),),
        in_specs=[
            pl.BlockSpec((TMB, D), lambda i: (i, 0)),
            pl.BlockSpec((TMB, D), lambda i: (i, 0)),
            pl.BlockSpec((TMB, 1), lambda i: (i, 0)),
            pl.BlockSpec((TMB, 1), lambda i: (i, 0)),
            pl.BlockSpec((1, D), lambda i: (0, 0)),
        ],
        out_specs=pl.BlockSpec((TMB, D), lambda i: (i, 0)),
        compiler_params=pltpu.CompilerParams(
            dimension_semantics=("parallel",),
            vmem_limit_bytes=VMEM_LIMIT),
    )(x2d, mean_node, alpha_node, train_mask, bias)


# --------------------------------------------------------------------- JJ_Norm statistics (plain JAX glue)
def _jj_norm_stats(x, labels, times, num_time, num_label, split):
    """Vectorized equivalent of JJ_Norm's python loops. x: (N, D) float32."""
    trainf = (times < split).astype(jnp.float32)                       # (N,)
    testf = 1.0 - trainf

    test_cnt = testf.sum()
    test_mean = (testf[:, None] * x).sum(0) / jnp.maximum(1.0, test_cnt)

    oh_t = jax.nn.one_hot(times, num_time, dtype=jnp.float32)          # (N, T)
    oh_l = jax.nn.one_hot(labels, num_label, dtype=jnp.float32)        # (N, L)
    oh_tl = oh_t[:, :, None] * oh_l[:, None, :] * trainf[:, None, None]  # (N, T, L)

    train_cnt = oh_tl.sum(0)                                           # (T, L)
    train_sum = jnp.einsum("ntl,nd->tld", oh_tl, x)                    # (T, L, D)
    train_time_cnt = train_cnt.sum(1)                                  # (T,)
    train_time_mean = train_sum.sum(1) / jnp.maximum(1.0, train_time_cnt)[:, None]
    train_mean = train_sum / jnp.maximum(1.0, train_cnt)[:, :, None]   # (T, L, D)

    test_var = (testf * jnp.sum((x - test_mean[None, :]) ** 2, axis=1)).sum()
    test_var = test_var / jnp.maximum(1.0, test_cnt - 1.0)

    # msq[t]: every train node at (t, l) contributes ||train_mean[t,l] - train_time_mean[t]||^2
    msq = (train_cnt * jnp.sum(
        (train_mean - train_time_mean[:, None, :]) ** 2, axis=-1)).sum(1)   # (T,)

    mean_node = train_mean[times, labels]                              # (N, D) per-node class mean
    per_node_rsq = trainf * jnp.sum((x - mean_node) ** 2, axis=1)      # (N,)
    rsq = (oh_t * per_node_rsq[:, None]).sum(0)                        # (T,)

    denom = jnp.maximum(1.0, train_time_cnt - 1.0)
    msq_n = msq / denom
    rsq_n = rsq / denom

    alpha_sq = (test_var - msq_n) / jnp.maximum(1e-6, rsq_n)
    alpha_t = jnp.where(alpha_sq > 0.0,
                        jnp.sqrt(jnp.maximum(alpha_sq, 0.0)), 0.0)     # (T,) (only t < split used)
    alpha_node = alpha_t[times]                                        # (N,)

    return mean_node, alpha_node[:, None], trainf[:, None]


# --------------------------------------------------------------------- full forward
def gat_conv_jj_forward(feat, adj, labels, times, params, *,
                        num_time, num_label, split, num_heads, out_feats):
    """Forward of GATConv_JJ (feat_drop=attn_drop=0, residual=False, bias=True, activation=None)."""
    N = feat.shape[0]
    H, F = num_heads, out_feats

    # lane-dense (N, H*F) straight out of the kernels (no transpose / reshape round-trip)
    x2d = gat_attention_aggregate(feat, params["fc_w"], params["attn_l"],
                                  params["attn_r"], adj, H)

    # TODO(synk): the original JJ_Norm indexes x.shape[1] of a 3-D (N, H, F) tensor, which
    # raises a broadcast error in PyTorch; we apply the same statistics on the flattened
    # (N, H*F) node features and reshape back.
    mean_node, alpha_node, train_mask = _jj_norm_stats(
        x2d, labels, times, num_time, num_label, split)
    normed = jj_blend(x2d, mean_node, alpha_node, train_mask, params["bias"])  # bias fused
    return normed.reshape(N, H, F)                                      # free row-major view


# --------------------------------------------------------------------- params / reference
def init_params(key, in_feats, out_feats, num_heads):
    gain = 2.0 ** 0.5                                                  # calculate_gain('relu')
    hf = num_heads * out_feats
    k1, k2, k3 = jax.random.split(key, 3)
    std_fc = gain * (2.0 / (in_feats + hf)) ** 0.5                     # xavier_normal_
    fc_w = std_fc * jax.random.normal(k1, (in_feats, hf), jnp.float32)     # (Din, H*F)
    std_attn = gain * (2.0 / (hf + out_feats)) ** 0.5
    attn_l = std_attn * jax.random.normal(k2, (1, hf), jnp.float32)        # head-major flat
    attn_r = std_attn * jax.random.normal(k3, (1, hf), jnp.float32)
    bias = jnp.zeros((1, hf), jnp.float32)
    return {"fc_w": fc_w, "attn_l": attn_l, "attn_r": attn_r, "bias": bias}


def reference_gat(x, w, al, ar, adj, num_heads):
    """Pure-JAX (f32) reference of the GAT hot path for a correctness check."""
    H = num_heads
    HF = w.shape[1]
    F = HF // H
    ph = x @ w
    mask = adj > 0.0
    outs = []
    for h in range(H):
        phh = ph[:, h * F:(h + 1) * F]
        el = (phh * al[:, h * F:(h + 1) * F]).sum(-1)
        er = (phh * ar[:, h * F:(h + 1) * F]).sum(-1)
        e = er[:, None] + el[None, :]
        e = jnp.where(e >= 0.0, e, NEG_SLOPE * e)
        e = jnp.where(mask, e, MASK_VAL)
        m = e.max(-1, keepdims=True)
        p = jnp.where(mask, jnp.exp(e - m), 0.0)
        a = p / jnp.maximum(p.sum(-1, keepdims=True), 1.0)
        outs.append(a @ phh)
    return jnp.concatenate(outs, axis=-1)


if __name__ == "__main__":
    N, Din, F, H = 16, 32, 16, 2          # nodes, in_feats, out_feats, num_heads
    T, L, SPLIT = 4, 3, 2                 # num_time, num_label, split

    key = jax.random.PRNGKey(0)
    kf, ka, kl, kt, kp = jax.random.split(key, 5)

    feat = jax.random.normal(kf, (N, Din), jnp.float32)
    adj = (jax.random.uniform(ka, (N, N)) < 0.3).astype(jnp.float32)
    adj = jnp.maximum(adj, jnp.eye(N, dtype=jnp.float32))              # self-loops: no 0-in-degree
    labels = jax.random.randint(kl, (N,), 0, L)
    times = jax.random.randint(kt, (N,), 0, T)
    times = times.at[0].set(0).at[1].set(T - 1)                        # ensure train + test nodes

    params = init_params(kp, Din, F, H)

    out = gat_conv_jj_forward(feat, adj, labels, times, params,
                              num_time=T, num_label=L, split=SPLIT,
                              num_heads=H, out_feats=F)
    out = jax.block_until_ready(out)
    assert out.shape == (N, H, F)
    assert bool(jnp.all(jnp.isfinite(out)))

    # sanity: Pallas GAT kernels match the pure-f32 JAX reference.
    # Tolerance is relaxed because the kernel intentionally uses bf16 MXU inputs for the
    # aggregation matmul and an approximate (EUP) reciprocal for the softmax scale.
    kern = jax.block_until_ready(
        gat_attention_aggregate(feat, params["fc_w"], params["attn_l"],
                                params["attn_r"], adj, H))
    ref = reference_gat(feat, params["fc_w"], params["attn_l"], params["attn_r"], adj, H)
    assert jnp.allclose(kern, ref, atol=5e-2, rtol=5e-2)

    print("KERNEL_OK")
</pallas_src>

<mosaic_0001>
module attributes {stable_mosaic.version = 11 : i64} {
  func.func @_project_kernel(%arg0: i32, %arg1: memref<16x32xf32, #tpu.memory_space<vmem>>, %arg2: memref<32x32xf32, #tpu.memory_space<vmem>>, %arg3: memref<1x32xf32, #tpu.memory_space<vmem>>, %arg4: memref<1x32xf32, #tpu.memory_space<vmem>>, %arg5: memref<16x32xf32, #tpu.memory_space<vmem>>, %arg6: memref<2x16xf32, #tpu.memory_space<vmem>>, %arg7: memref<16x2xf32, #tpu.memory_space<vmem>>) attributes {dimension_semantics = [#tpu.dimension_semantics<parallel>], iteration_bounds = array<i64: 1>, scalar_prefetch = 0 : i64, scratch_operands = 0 : i64, tpu.core_type = #tpu.core_type<tc>, window_params = [{transform_indices = @transform_0, window_bounds = array<i64: 16, 32>}, {pipeline_mode = #tpu.pipeline_mode<synchronous>, transform_indices = @transform_1, window_bounds = array<i64: 32, 32>}, {pipeline_mode = #tpu.pipeline_mode<synchronous>, transform_indices = @transform_2, window_bounds = array<i64: 1, 32>}, {pipeline_mode = #tpu.pipeline_mode<synchronous>, transform_indices = @transform_3, window_bounds = array<i64: 1, 32>}, {transform_indices = @transform_4, window_bounds = array<i64: 16, 32>}, {transform_indices = @transform_5, window_bounds = array<i64: 2, 16>}, {transform_indices = @transform_6, window_bounds = array<i64: 16, 2>}]} {
    %c0 = arith.constant 0 : index
    %c0_0 = arith.constant 0 : index
    %0 = vector.load %arg1[%c0, %c0_0] : memref<16x32xf32, #tpu.memory_space<vmem>>, vector<16x32xf32>
    %c0_1 = arith.constant 0 : index
    %c0_2 = arith.constant 0 : index
    %1 = vector.load %arg2[%c0_1, %c0_2] : memref<32x32xf32, #tpu.memory_space<vmem>>, vector<32x32xf32>
    %cst = arith.constant dense<0.000000e+00> : vector<16x32xf32>
    %2 = tpu.matmul %0, %1, %cst {dimension_numbers = #tpu.dot_dimension_numbers<[1], [0], [0], [1], [0, 0, 1, 1], [], []>} : vector<16x32xf32>, vector<32x32xf32>, vector<16x32xf32> -> vector<16x32xf32>
    %c0_3 = arith.constant 0 : index
    %c0_4 = arith.constant 0 : index
    %3 = vector.load %arg5[%c0_3, %c0_4] : memref<16x32xf32, #tpu.memory_space<vmem>>, vector<16x32xf32>
    tpu.vector_store %arg5[%c0_3, %c0_4], %2 {strides = array<i32>} : memref<16x32xf32, #tpu.memory_space<vmem>>, vector<16x32xf32>,
    %4 = vector.extract_strided_slice %2 {offsets = [0, 0], sizes = [16, 16], strides = [1, 1]} : vector<16x32xf32> to vector<16x16xf32>
    %c0_5 = arith.constant 0 : index
    %c0_6 = arith.constant 0 : index
    %5 = vector.load %arg3[%c0_5, %c0_6] : memref<1x32xf32, #tpu.memory_space<vmem>>, vector<1x16xf32>
    %c0_7 = arith.constant 0 : index
    %c0_8 = arith.constant 0 : index
    %6 = vector.load %arg4[%c0_7, %c0_8] : memref<1x32xf32, #tpu.memory_space<vmem>>, vector<1x16xf32>
    %cst_9 = arith.constant dense<0.000000e+00> : vector<1x16xf32>
    %7 = tpu.matmul %5, %4, %cst_9 {dimension_numbers = #tpu.dot_dimension_numbers<[1], [1], [0], [0], [0, 0, 1, 0], [], []>} : vector<1x16xf32>, vector<16x16xf32>, vector<1x16xf32> -> vector<1x16xf32>
    %8 = vector.broadcast %6 : vector<1x16xf32> to vector<16x16xf32>
    %9 = arith.mulf %4, %8 : vector<16x16xf32>
    %cst_10 = arith.constant dense<0.000000e+00> : vector<16xf32>
    %10 = vector.multi_reduction <add>, %9, %cst_10 [1] : vector<16x16xf32> to vector<16xf32>
    %11 = vector.shape_cast %10 : vector<16xf32> to vector<16x1xf32>
    %12 = vector.extract_strided_slice %2 {offsets = [0, 16], sizes = [16, 16], strides = [1, 1]} : vector<16x32xf32> to vector<16x16xf32>
    %c0_11 = arith.constant 0 : index
    %c16 = arith.constant 16 : index
    %13 = vector.load %arg3[%c0_11, %c16] : memref<1x32xf32, #tpu.memory_space<vmem>>, vector<1x16xf32>
    %c0_12 = arith.constant 0 : index
    %c16_13 = arith.constant 16 : index
    %14 = vector.load %arg4[%c0_12, %c16_13] : memref<1x32xf32, #tpu.memory_space<vmem>>, vector<1x16xf32>
    %cst_14 = arith.constant dense<0.000000e+00> : vector<1x16xf32>
    %15 = tpu.matmul %13, %12, %cst_14 {dimension_numbers = #tpu.dot_dimension_numbers<[1], [1], [0], [0], [0, 0, 1, 0], [], []>} : vector<1x16xf32>, vector<16x16xf32>, vector<1x16xf32> -> vector<1x16xf32>
    %16 = vector.broadcast %14 : vector<1x16xf32> to vector<16x16xf32>
    %17 = arith.mulf %12, %16 : vector<16x16xf32>
    %cst_15 = arith.constant dense<0.000000e+00> : vector<16xf32>
    %18 = vector.multi_reduction <add>, %17, %cst_15 [1] : vector<16x16xf32> to vector<16xf32>
    %19 = vector.shape_cast %18 : vector<16xf32> to vector<16x1xf32>
    %20 = tpu.concatenate %7, %15 in 0 : vector<1x16xf32>, vector<1x16xf32> -> vector<2x16xf32>
    %c0_16 = arith.constant 0 : index
    %c0_17 = arith.constant 0 : index
    %21 = vector.load %arg6[%c0_16, %c0_17] : memref<2x16xf32, #tpu.memory_space<vmem>>, vector<2x16xf32>
    tpu.vector_store %arg6[%c0_16, %c0_17], %20 {strides = array<i32>} : memref<2x16xf32, #tpu.memory_space<vmem>>, vector<2x16xf32>,
    %22 = tpu.concatenate %11, %19 in 1 : vector<16x1xf32>, vector<16x1xf32> -> vector<16x2xf32>
    %c0_18 = arith.constant 0 : index
    %c0_19 = arith.constant 0 : index
    %23 = vector.load %arg7[%c0_18, %c0_19] : memref<16x2xf32, #tpu.memory_space<vmem>>, vector<16x2xf32>
    tpu.vector_store %arg7[%c0_18, %c0_19], %22 {strides = array<i32>} : memref<16x2xf32, #tpu.memory_space<vmem>>, vector<16x2xf32>,
    return
  }
  func.func @transform_0(%arg0: i32) -> (i32, i32) {
    %c0_i32 = arith.constant 0 : i32
    %c0_i32_0 = arith.constant 0 : i32
    return %arg0, %c0_i32 : i32, i32
  }
  func.func @transform_1(%arg0: i32) -> (i32, i32) {
    %c0_i32 = arith.constant 0 : i32
    %c0_i32_0 = arith.constant 0 : i32
    %c0_i32_1 = arith.constant 0 : i32
    return %c0_i32, %c0_i32_0 : i32, i32
  }
  func.func @transform_2(%arg0: i32) -> (i32, i32) {
    %c0_i32 = arith.constant 0 : i32
    %c0_i32_0 = arith.constant 0 : i32
    %c0_i32_1 = arith.constant 0 : i32
    return %c0_i32, %c0_i32_0 : i32, i32
  }
  func.func @transform_3(%arg0: i32) -> (i32, i32) {
    %c0_i32 = arith.constant 0 : i32
    %c0_i32_0 = arith.constant 0 : i32
    %c0_i32_1 = arith.constant 0 : i32
    return %c0_i32, %c0_i32_0 : i32, i32
  }
  func.func @transform_4(%arg0: i32) -> (i32, i32) {
    %c0_i32 = arith.constant 0 : i32
    %c0_i32_0 = arith.constant 0 : i32
    return %arg0, %c0_i32 : i32, i32
  }
  func.func @transform_5(%arg0: i32) -> (i32, i32) {
    %c0_i32 = arith.constant 0 : i32
    %c0_i32_0 = arith.constant 0 : i32
    return %c0_i32, %arg0 : i32, i32
  }
  func.func @transform_6(%arg0: i32) -> (i32, i32) {
    %c0_i32 = arith.constant 0 : i32
    %c0_i32_0 = arith.constant 0 : i32
    return %arg0, %c0_i32 : i32, i32
  }
}

</mosaic_0001>

<bundles_post_ra>
// kernel: tpu_custom_call.1
= control target key start
LH: loop header
LB: loop body
LE: loop exit
PB: predicated region body
PF: predicated region fallthrough
CT: control target
= control target key end

     0   :  { %12 = vsyncpa [#allocation3], 0  ;;  %s692_s0 = inlined_call_operand.hbm [shape: f32[16,32], index: 0, kind: input, shape index: {}]   ;;  %s693_s1 = inlined_call_operand.hbm [shape: f32[32,32], index: 1, kind: input, shape index: {}]   ;;  %s694_s2 = inlined_call_operand.vmem [shape: f32[1,32], index: 2, kind: input, shape index: {}]   ;;  %s695_s3 = inlined_call_operand.vmem [shape: f32[1,32], index: 3, kind: input, shape index: {}]   ;;  %s696_s4 = inlined_call_operand.hbm [shape: f32[16,32], index: 4, kind: output, shape index: {0}]   ;;  %s697_s5 = inlined_call_operand.hbm [shape: f32[2,16], index: 5, kind: output, shape index: {1}]   ;;  %s698_s6 = inlined_call_operand.vmem [shape: f32[16,2], index: 6, kind: output, shape index: {2}]  }
   0x1   :  { %13 = vsyncpa [#allocation6], 0 }
   0x2   :  { %14 = vsyncpa [#allocation4], 0 }
   0x3   :  { %15 = vsyncpa [#allocation9], 0  ;;  %s558_s21 = smov [#allocation2]   ;;  %s462_s25 = scalar_lea.hbm %s692_s0, 256 }
   0x4   :  { %s21_s22 = sshll.u32 %s558_s21, 4  ;;  %p463_p0 = scmp.ne.s32.totalorder %s692_s0, %s462_s25  ;;  %s22_s22 = int_to_ptr.vmem [resolvable:$true] %s21_s22 }
   0x5   :  { %p466_p1 = scmp.lt.u32.totalorder %s462_s25, %s692_s0 }
   0x7   :  { %p468_p2 = pnand %p466_p1, %p463_p0 }
   0x9   :  { %471 = shalt.err (!%p468_p2)
}
   0xa   :  { %s472_s30 = scalar_lea.vmem %s22_s22, 256  ;;  %p477_p4 = scmp.lt.s32.totalorder %s22_s22, %s22_s22 }
   0xb   :  { %p473_p3 = scmp.ne.s32.totalorder %s22_s22, %s472_s30  ;;  %p478_p5 = scmp.lt.s32.totalorder %s472_s30, %s472_s30 }
   0xd   :  { %p479_p6 = por %p478_p5, %p477_p4 }
   0xf   :  { %p480_p7 = pnand %p479_p6, %p473_p3 }
  0x11   :  { %483 = shalt.err (!%p480_p7)
}
  0x12   :  { %s559_s7 = smov 128   ;;  %s560_s8 = smov 8  }
  0x13   :  { %27 = dma.hbm_to_vmem [thread:$0]  %s692_s0, 256, %s22_s22, [#allocation3], %s559_s7, %s559_s7, %s560_s8  }
  0x14   :  { %s561_s11 = smov [#allocation5]   ;;  %s484_s15 = scalar_lea.hbm %s693_s1, 512 }
  0x15   :  { %s33_s12 = sshll.u32 %s561_s11, 4  ;;  %p485_p8 = scmp.ne.s32.totalorder %s693_s1, %s484_s15  ;;  %s34_s12 = int_to_ptr.vmem [resolvable:$true] %s33_s12 }
  0x16   :  { %p488_p9 = scmp.lt.u32.totalorder %s484_s15, %s693_s1 }
  0x18   :  { %p490_p10 = pnand %p488_p9, %p485_p8 }
  0x1a   :  { %493 = shalt.err (!%p490_p10)
}
  0x1b   :  { %s494_s20 = scalar_lea.vmem %s34_s12, 512  ;;  %p499_p12 = scmp.lt.s32.totalorder %s34_s12, %s34_s12 }
  0x1c   :  { %p495_p11 = scmp.ne.s32.totalorder %s34_s12, %s494_s20  ;;  %p500_p13 = scmp.lt.s32.totalorder %s494_s20, %s494_s20 }
  0x1e   :  { %p501_p0 = por %p500_p13, %p499_p12 }
  0x20   :  { %p502_p1 = pnand %p501_p0, %p495_p11 }
  0x22   :  { %505 = shalt.err (!%p502_p1)
}
  0x23   :  { %39 = dma.hbm_to_vmem [thread:$0]  %s693_s1, 512, %s34_s12, [#allocation6], %s559_s7, %s559_s7, %s560_s8  }
  0x24   :  { %550 = dma.done.wait [#allocation3], 256  }
  0x25   :  { %551 = vsyncadd [#allocation3], 4294967040 }
  0x26   :  { %552 = dma.done.wait [#allocation6], 512  }
  0x27   :  { %553 = vsyncadd [#allocation6], 4294966784  ;;  %vm56_vm0 = vcmask 261120   ;;  %v52_v0 = vld [vmem:[#allocation5] sm:$0xff]  ;;  %v53_v1 = vld [vmem:[#allocation5 + $0x8] sm:$0xff]  ;;  %v562_v8 = vmov 0.0|0.0   ;;  %v236_v9 = vlaneseq }
  0x28   :  { %v54_v2 = vld [vmem:[#allocation5 + $0x10] sm:$0xff]  ;;  %v431_v3 = vpack.c.bf16 %v53_v1, %v52_v0  ;;  %v55_v4 = vld [vmem:[#allocation5 + $0x18] sm:$0xff]  ;;  %439 = vmatprep.subr.bf16.mxu1 %v562_v8  ;;  %vm563_vm1 = vmmov 0   ;;  %v564_v11 = vmov 0.0   ;;  %vm142_vm2 = vcmask 130048  }
  0x29   :  { %v50_v5 = vld [vmem:[#allocation2] sm:$0xff]  ;;  %v435_v6 = vpack.c.bf16 %v55_v4, %v54_v2  ;;  %v51_v7 = vld [vmem:[#allocation2 + $0x8] sm:$0xff]  ;;  %v237_v10 = vshrl.u32 %v236_v9, 7  ;;  %421 = vmatprep.mubr.msk.f32.mxu1 %vm563_vm1, %v564_v11  ;;  %vm645_vm3 = vmpackc.low %vm142_vm2, %vm142_vm2 }
  0x2a   :  { %414 = vmatprep.mubr.msk.f32.mxu0 %vm56_vm0, %v50_v5  ;;  %432 = vmatprep.subr.bf16.mxu0 %v431_v3  ;;  %v390_v12 = vld [vmem:[%s695_s3] ss:$0 sm:$0xff]  ;;  %s565_s3 = smov 112  }
  0x2b   :  { %434 = vmatpush3.bf16.msra.mxu0 %v431_v3  ;;  %v238_v14 = vsub.s32 0, %v237_v10  ;;  %v140_v16 = vld [vmem:[%s694_s2] sm:$0x1]  ;;  %s566_s2 = smov [#allocation7]  }
  0x2c   :  { %436 = vmatprep.subr.bf16.mxu0 %v435_v6  ;;  %s354_s25 = sshll.u32 %s566_s2, 4  ;;  %s355_s25 = int_to_ptr.vmem [resolvable:$true] %s354_s25 }
  0x2d   :  { %v239_v21 = vrot.slane %v140_v16, %v238_v14  ;;  %s506_s26 = scalar_lea.vmem %s355_s25, 256  ;;  %p511_p3 = scmp.lt.s32.totalorder %s355_s25, %s355_s25 }
  0x2e   :  { %p507_p2 = scmp.ne.s32.totalorder %s355_s25, %s506_s26  ;;  %p512_p4 = scmp.lt.s32.totalorder %s506_s26, %s506_s26 }
  0x2f   :  { %438 = vmatpush3.bf16.msra.mxu0 %v435_v6 }
  0x30   :  { %443 = vmatprep.subr.bf16.mxu0 %v562_v8  ;;  %p513_p5 = por %p512_p4, %p511_p3 }
  0x32   :  { %415 = vmatmul.mubr.msk.f32.vlgmr.msra.gmra.mrb[0].mxu0 %vm56_vm0, %v51_v7  ;;  %p514_p6 = pnand %p513_p5, %p507_p2 }
  0x33   :  { %428 = vmatprep.mubr.msk.f32.mxu0 %vm563_vm1, %v564_v11 }
 0x105   :  { %v416_v13 = vpop.f32.mrb[0].mxu0 }
 0x106   :  { %139 = vst.msk [vmem:[#allocation7 + $0x8] sm:$0xff] %vm56_vm0, %v416_v13  ;;  %v129_v15 = vpop.f32.mrb[1].mxu0  ;;  %v229_v22 = vmul.f32 %v416_v13, %v390_v12 }
 0x107   :  { %138 = vst.msk [vmem:[#allocation7] sm:$0xff] %vm56_vm0, %v129_v15  ;;  %v457_v17 = vpack.i.bf16 %v416_v13, %v129_v15  ;;  %v228_v18 = vmul.f32 %v390_v12, %v129_v15  ;;  %v440_v19 = vpack.c.bf16 %v416_v13, %v129_v15 }
 0x108   :  { %v233_v24 = vsel %vm142_vm2, %v229_v22, 0.0 }
 0x109   :  { %458 = vrot.lane.b32.xlu0 %v457_v17, %s565_s3  ;;  %324 = vrot.lane.b32.xlu1 %v228_v18, %s565_s3  ;;  %v230_v23 = vsel %vm142_vm2, %v228_v18, 0.0 }
 0x10a   :  { %442 = vmatpush3.bf16.xpose.msk.msra.mxu1 %vm645_vm3, %v440_v19 }
 0x10d   :  { %240 = vrot.lane.b32.xlu0 %v239_v21, %s565_s3  ;;  %326 = vrot.lane.b32.xlu1 %v229_v22, %s565_s3 }
 0x111   :  { %422 = vmatmul.mubr.msk.f32.vlgmr.msra.gmra.mrb[0].mxu1 %vm142_vm2, %v140_v16 }
 0x12c   :  { %231 = vadd.xlane.f32.xlu0 %v230_v23 }
 0x131   :  { %234 = vadd.xlane.f32.xlu1 %v233_v24 }
 0x17b   :  { %v459_v25 = vpop.permute.xlu0 %458  ;;  %v325_v26 = vpop.permute.xlu1 %324 }
 0x17c   :  { %v461_v27 = vunpack.i.h.bf16 %v459_v25  ;;  %v460_v28 = vunpack.i.l.bf16 %v459_v25  ;;  %v330_v29 = vsel %vm142_vm2, %v325_v26, 0.0 }
 0x17d   :  { %331 = vadd.xlane.f32.xlu0 %v330_v29 }
 0x17e   :  { %v444_v30 = vpack.c.bf16 %v461_v27, %v460_v28 }
 0x17f   :  { %v327_v31 = vpop.permute.xlu1 %326  ;;  %v241_v33 = vpop.permute.xlu0 %240 }
 0x180   :  { %446 = vmatpush3.bf16.xpose.msk.msra.mxu0 %vm645_vm3, %v444_v30  ;;  %v333_v32 = vsel %vm142_vm2, %v327_v31, 0.0 }
 0x181   :  { %334 = vadd.xlane.f32.xlu0 %v333_v32 }
 0x187   :  { %429 = vmatmul.mubr.msk.f32.vlgmr.msra.gmra.mrb[2].mxu0 %vm142_vm2, %v241_v33 }
 0x188   :  { %517 = shalt.err (!%p514_p6)
}
 0x189   :  { %s518_s29 = scalar_lea.hbm %s696_s4, 256 }
 0x18a   :  { %p519_p7 = scmp.ne.s32.totalorder %s696_s4, %s518_s29  ;;  %p522_p8 = scmp.lt.u32.totalorder %s518_s29, %s696_s4 }
 0x18c   :  { %p524_p9 = pnand %p522_p8, %p519_p7 }
 0x18e   :  { %527 = shalt.err (!%p524_p9)
}
 0x18f   :  { %360 = dma.vmem_to_hbm [thread:$0]  %s355_s25, 256, %s696_s4, [#allocation4], %s559_s7, %s559_s7, %s560_s8   ;;  %vm343_vm4 = vcmask 7168   ;;  %vm346_vm5 = vcmask 15360   ;;  %vm339_vm6 = vcmask 1040384   ;;  %vm341_vm7 = vcmask 123904  }
 0x190   :  { %s567_s18 = smov [#allocation8]  }
 0x191   :  { %s367_s4 = sshll.u32 %s567_s18, 4  ;;  %s368_s4 = int_to_ptr.vmem [resolvable:$true] %s367_s4 }
 0x192   :  { %s528_s7 = scalar_lea.vmem %s368_s4, 32  ;;  %p533_p11 = scmp.lt.s32.totalorder %s368_s4, %s368_s4 }
 0x193   :  { %p529_p10 = scmp.ne.s32.totalorder %s368_s4, %s528_s7  ;;  %p534_p12 = scmp.lt.s32.totalorder %s528_s7, %s528_s7 }
 0x195   :  { %p535_p13 = por %p534_p12, %p533_p11 }
 0x197   :  { %p536_p0 = pnand %p535_p13, %p529_p10 }
 0x1b9   :  { %v232_v36 = vpop.xlane.xlu0 %231 }
 0x1be   :  { %v235_v39 = vpop.xlane.xlu1 %234 }
 0x1e4   :  { %v218_v34 = vpop.f32.mrb[0].mxu1 }
 0x1e5   :  { %v423_v35 = vpop.f32.mrb[1].mxu1 }
 0x20a   :  { %v332_v37 = vpop.xlane.xlu0 %331 }
 0x20b   :  { %v344_v38 = vsel %vm343_vm4, %v232_v36, %v332_v37 }
 0x20c   :  { %347 = vst.msk [vmem:[%s698_s6] sm:$0xff] %vm346_vm5, %v344_v38 }
 0x20e   :  { %v335_v40 = vpop.xlane.xlu0 %334 }
 0x20f   :  { %v345_v41 = vsel %vm343_vm4, %v235_v39, %v335_v40 }
 0x210   :  { %348 = vst.msk [vmem:[%s698_s6 + $0x8] sm:$0xff] %vm346_vm5, %v345_v41 }
 0x25a   :  { %v318_v42 = vpop.f32.mrb[2].mxu0 }
 0x25b   :  { %v337_v43 = vrot.slane %v318_v42, 7  ;;  %v430_v44 = vpop.f32.mrb[3].mxu0 }
 0x25d   :  { %v340_v45 = vsel %vm339_vm6, %v218_v34, %v337_v43 }
 0x25e   :  { %342 = vst.msk [vmem:[#allocation8] sm:$0x3] %vm341_vm7, %v340_v45 }
 0x25f   :  { %539 = shalt.err (!%p536_p0)
}
 0x260   :  { %s540_s6 = scalar_lea.hbm %s697_s5, 32 }
 0x261   :  { %p541_p1 = scmp.ne.s32.totalorder %s697_s5, %s540_s6  ;;  %p544_p2 = scmp.lt.u32.totalorder %s540_s6, %s697_s5 }
 0x263   :  { %p546_p3 = pnand %p544_p2, %p541_p1 }
 0x265   :  { %549 = shalt.err (!%p546_p3)
}
 0x266   :  { %370 = dma.vmem_to_hbm [thread:$0]  %s368_s4, 32, %s697_s5, [#allocation9]  }
 0x267   :  { %554 = dma.done.wait [#allocation4], 256  }
 0x268   :  { %555 = vsyncadd [#allocation4], 4294967040 }
 0x269   :  { %556 = dma.done.wait [#allocation9], 32  }
 0x26a   :  { %557 = vsyncadd [#allocation9], 4294967264 }
 0x26b   :  { %381 = vsyncpa [#allocation3], 1 }
 0x26c   :  { %382 = vsyncpa [#allocation6], 1 }
 0x26d   :  { %383 = vsyncpa [#allocation4], 1 }
 0x26e   :  { %384 = vsyncpa [#allocation9], 1 }

</bundles_post_ra>
